<compile_context>
chip_gen: v5e
topology: v5e:2x2
jax: 0.10.0
libtpu: 0.0.40
codegen_flags: <defaults>
</compile_context>

<pallas_src>
import jax
import jax.numpy as jnp
from jax.experimental import pallas as pl
from jax.experimental.pallas import tpu as pltpu


def _round_up(x, m):
    return ((x + m - 1) // m) * m


def prepare_core_params(w_i2h, b_i2h, w_h2h, b_h2h, compute_dtype=jnp.float32):
    """Zero-pad the two Linear layers to lane-dense shapes.

    w_i2h: (I, H), w_h2h: (H, H)  (x @ W layout, i.e. transpose of PyTorch (out, in))
    Returns:
      wi: (I, H_pad)      compute_dtype
      wh: (H_pad, H_pad)  compute_dtype
      b : (1, H_pad)      f32, b_i2h + b_h2h in the first H lanes, 0 elsewhere
      H_pad
    """
    I, H = w_i2h.shape
    H_pad = _round_up(H, 128)
    wi = jnp.zeros((I, H_pad), compute_dtype).at[:, :H].set(w_i2h.astype(compute_dtype))
    wh = jnp.zeros((H_pad, H_pad), compute_dtype).at[:H, :H].set(w_h2h.astype(compute_dtype))
    b = jnp.zeros((1, H_pad), jnp.float32).at[0, :H].set((b_i2h + b_h2h).astype(jnp.float32))
    return wi, wh, b, H_pad


def core_rnn_block_kernel(z_ref, h0_ref, wi_ref, wh_ref, b_ref, out_ref, h_scr):
    """One grid step = Tb RNN timesteps.

    z_ref  : (Tb*B_pad, I)       Tb timesteps of features, batch-major per step
    h0_ref : (B_pad, H_pad)      initial hidden state (resident)
    wi_ref : (I, H_pad)          i2h weight (resident, compute dtype)
    wh_ref : (H_pad, H_pad)      h2h weight (resident, compute dtype)
    b_ref  : (1, H_pad)          fused bias b_i2h + b_h2h (f32, resident)
    out_ref: (Tb*B_pad, H_pad)   h_t outputs (f32, lane+sublane dense)
    h_scr  : (B_pad, H_pad)      f32 VMEM carry of h across grid steps
    """
    b_pad, _ = h0_ref.shape
    tb = z_ref.shape[0] // b_pad
    cdt = wi_ref.dtype

    @pl.when(pl.program_id(0) == 0)
    def _():
        h_scr[...] = h0_ref[...]

    # (1) i2h projection of all Tb timesteps in one MXU call (M = Tb*B_pad),
    #     bias folded in once; staged through out_ref so vreg pressure does
    #     not scale with Tb.
    zw = jnp.dot(z_ref[...].astype(cdt), wi_ref[...],
                 preferred_element_type=jnp.float32)
    out_ref[...] = zw + b_ref[...]

    # (2) Serial recurrence, fully unrolled (Tb static => static addressing).
    #     h is carried as an SSA value in vregs; the zw load and h_t store
    #     are off the h -> h critical path (dot -> add -> relu -> dot).
    wh = wh_ref[...]
    h = h_scr[...]
    for t in range(tb):
        rows = pl.ds(t * b_pad, b_pad)
        h = jnp.maximum(
            out_ref[rows, :]
            + jnp.dot(h.astype(cdt), wh, preferred_element_type=jnp.float32),
            0.0,
        )
        out_ref[rows, :] = h
    h_scr[...] = h


def core_rnn_sequence(z_seq, h0, w_i2h, b_i2h, w_h2h, b_h2h,
                      *, compute_dtype=jnp.float32, block_t=8):
    """Run the CoreNetwork cell over a whole sequence in a single pallas_call.

    z_seq: (T, B, I)  h0: (B, H)   ->   h_seq: (T, B, H)   (float32)
    """
    T, B, I = z_seq.shape
    H = w_h2h.shape[0]
    wi, wh, b, H_pad = prepare_core_params(w_i2h, b_i2h, w_h2h, b_h2h, compute_dtype)

    B_pad = max(_round_up(B, 8), 8)           # full f32 sublane
    Tb = max(1, min(block_t, T))              # timesteps per grid step
    T_pad = _round_up(T, Tb)

    # Pad batch (and tail timesteps) with zeros; I is left unpadded (block
    # last dim == full array dim, so no lane pre-pad of the whole sequence).
    z_p = jnp.zeros((T_pad, B_pad, I), jnp.float32).at[:T, :B, :].set(
        z_seq.astype(jnp.float32))
    z2d = z_p.reshape(T_pad * B_pad, I)
    h0_p = jnp.zeros((B_pad, H_pad), jnp.float32).at[:B, :H].set(
        h0.astype(jnp.float32))

    # Explicit VMEM budget (constants + double-buffered streamed blocks).
    cbytes = jnp.dtype(compute_dtype).itemsize
    z_blk = Tb * B_pad * I * 4
    out_blk = Tb * B_pad * H_pad * 4
    const_bytes = (I * H_pad + H_pad * H_pad) * cbytes + H_pad * 4 + B_pad * H_pad * 4
    est = 2 * (z_blk + out_blk + const_bytes) + B_pad * H_pad * 4
    vmem_limit = int(min(max(32 << 20, 2 * est), 64 << 20))

    out = pl.pallas_call(
        core_rnn_block_kernel,
        out_shape=jax.ShapeDtypeStruct((T_pad * B_pad, H_pad), jnp.float32),
        grid_spec=pltpu.PrefetchScalarGridSpec(
            num_scalar_prefetch=0,
            grid=(T_pad // Tb,),
            in_specs=[
                pl.BlockSpec((Tb * B_pad, I), lambda s: (s, 0)),        # z block (streamed)
                pl.BlockSpec((B_pad, H_pad), lambda s: (0, 0)),         # h0 (resident)
                pl.BlockSpec((I, H_pad), lambda s: (0, 0)),             # W_i2h (resident)
                pl.BlockSpec((H_pad, H_pad), lambda s: (0, 0)),         # W_h2h (resident)
                pl.BlockSpec((1, H_pad), lambda s: (0, 0)),             # bias (resident)
            ],
            out_specs=pl.BlockSpec((Tb * B_pad, H_pad), lambda s: (s, 0)),
            scratch_shapes=[pltpu.VMEM((B_pad, H_pad), jnp.float32)],   # h carry
        ),
        compiler_params=pltpu.CompilerParams(
            dimension_semantics=("arbitrary",),  # recurrence is sequential: never "parallel"
            vmem_limit_bytes=vmem_limit,
        ),
    )(z2d, h0_p, wi, wh, b)

    return out.reshape(T_pad, B_pad, H_pad)[:T, :B, :H]


def core_network_forward(z_t, h_prev, w_i2h, b_i2h, w_h2h, b_h2h,
                         *, compute_dtype=jnp.float32):
    """Single-step forward, matching CoreNetwork.forward: relu(i2h(z)+h2h(h))."""
    return core_rnn_sequence(z_t[None], h_prev, w_i2h, b_i2h, w_h2h, b_h2h,
                             compute_dtype=compute_dtype, block_t=1)[0]


def init_linear_params(key, fan_in, fan_out):
    """PyTorch nn.Linear default init: U(-1/sqrt(fan_in), 1/sqrt(fan_in))."""
    kw, kb = jax.random.split(key)
    bound = 1.0 / jnp.sqrt(jnp.float32(fan_in))
    # stored as (in, out) so the kernel does x @ W directly
    w = jax.random.uniform(kw, (fan_in, fan_out), jnp.float32, -bound, bound)
    b = jax.random.uniform(kb, (fan_out,), jnp.float32, -bound, bound)
    return w, b


if __name__ == "__main__":
    B = 2
    input_size = 32
    hidden_size = 32
    T = 8

    key = jax.random.PRNGKey(0)
    k_z, k_h, k_i2h, k_h2h = jax.random.split(key, 4)

    z_seq = jax.random.normal(k_z, (T, B, input_size), jnp.float32)
    h0 = jax.random.normal(k_h, (B, hidden_size), jnp.float32)

    w_i2h, b_i2h = init_linear_params(k_i2h, input_size, hidden_size)
    w_h2h, b_h2h = init_linear_params(k_h2h, hidden_size, hidden_size)

    # --- single step (the module's forward semantics), f32 path ---
    h1 = core_network_forward(z_seq[0], h0, w_i2h, b_i2h, w_h2h, b_h2h)
    h1 = jax.block_until_ready(h1)
    ref1 = jnp.maximum(z_seq[0] @ w_i2h + b_i2h + h0 @ w_h2h + b_h2h, 0.0)
    assert h1.shape == (B, hidden_size)
    assert jnp.allclose(h1, ref1, atol=1e-4), "single-step mismatch vs reference"

    # --- fused T-step recurrence (Tb timesteps per grid step), f32 path ---
    h_seq = core_rnn_sequence(z_seq, h0, w_i2h, b_i2h, w_h2h, b_h2h, block_t=8)
    h_seq = jax.block_until_ready(h_seq)

    def ref_step(h, z):
        hn = jnp.maximum(z @ w_i2h + b_i2h + h @ w_h2h + b_h2h, 0.0)
        return hn, hn

    _, ref_seq = jax.lax.scan(ref_step, h0, z_seq)
    assert h_seq.shape == (T, B, hidden_size)
    assert jnp.allclose(h_seq, ref_seq, atol=1e-4), "sequence mismatch vs reference"

    # --- bf16 weights/activations for the MXU (f32 accumulation/epilogue) ---
    h_seq_bf16 = core_rnn_sequence(z_seq, h0, w_i2h, b_i2h, w_h2h, b_h2h,
                                   compute_dtype=jnp.bfloat16, block_t=8)
    h_seq_bf16 = jax.block_until_ready(h_seq_bf16)
    assert jnp.allclose(h_seq_bf16, ref_seq, atol=5e-2, rtol=5e-2), \
        "bf16 sequence mismatch vs reference"

    print("KERNEL_OK")
</pallas_src>

<mosaic_0001>
module attributes {stable_mosaic.version = 11 : i64} {
  func.func @core_rnn_block_kernel(%arg0: i32, %arg1: memref<8x32xf32, #tpu.memory_space<vmem>>, %arg2: memref<8x128xf32, #tpu.memory_space<vmem>>, %arg3: memref<32x128xf32, #tpu.memory_space<vmem>>, %arg4: memref<128x128xf32, #tpu.memory_space<vmem>>, %arg5: memref<1x128xf32, #tpu.memory_space<vmem>>, %arg6: memref<8x128xf32, #tpu.memory_space<vmem>>, %arg7: memref<8x128xf32, #tpu.memory_space<vmem>>) attributes {dimension_semantics = [#tpu.dimension_semantics<arbitrary>], iteration_bounds = array<i64: 1>, scalar_prefetch = 0 : i64, scratch_operands = 1 : i64, tpu.core_type = #tpu.core_type<tc>, window_params = [{transform_indices = @transform_0, window_bounds = array<i64: 8, 32>}, {pipeline_mode = #tpu.pipeline_mode<synchronous>, transform_indices = @transform_1, window_bounds = array<i64: 8, 128>}, {pipeline_mode = #tpu.pipeline_mode<synchronous>, transform_indices = @transform_2, window_bounds = array<i64: 32, 128>}, {pipeline_mode = #tpu.pipeline_mode<synchronous>, transform_indices = @transform_3, window_bounds = array<i64: 128, 128>}, {pipeline_mode = #tpu.pipeline_mode<synchronous>, transform_indices = @transform_4, window_bounds = array<i64: 1, 128>}, {transform_indices = @transform_5, window_bounds = array<i64: 8, 128>}]} {
    %c0_i32 = arith.constant 0 : i32
    %0 = arith.cmpi eq, %arg0, %c0_i32 : i32
    %1 = arith.extui %0 : i1 to i32
    %c0_i32_0 = arith.constant 0 : i32
    %2 = arith.cmpi ne, %1, %c0_i32_0 : i32
    scf.if %2 {
      %c0_20 = arith.constant 0 : index
      %c0_21 = arith.constant 0 : index
      %19 = vector.load %arg2[%c0_20, %c0_21] : memref<8x128xf32, #tpu.memory_space<vmem>>, vector<8x128xf32>
      %c0_22 = arith.constant 0 : index
      %c0_23 = arith.constant 0 : index
      %20 = vector.load %arg7[%c0_22, %c0_23] : memref<8x128xf32, #tpu.memory_space<vmem>>, vector<8x128xf32>
      tpu.vector_store %arg7[%c0_22, %c0_23], %19 {strides = array<i32>} : memref<8x128xf32, #tpu.memory_space<vmem>>, vector<8x128xf32>,
    } else {
    }
    %c0 = arith.constant 0 : index
    %c0_1 = arith.constant 0 : index
    %3 = vector.load %arg1[%c0, %c0_1] : memref<8x32xf32, #tpu.memory_space<vmem>>, vector<8x32xf32>
    %c0_2 = arith.constant 0 : index
    %c0_3 = arith.constant 0 : index
    %4 = vector.load %arg3[%c0_2, %c0_3] : memref<32x128xf32, #tpu.memory_space<vmem>>, vector<32x128xf32>
    %cst = arith.constant dense<0.000000e+00> : vector<8x128xf32>
    %5 = tpu.matmul %3, %4, %cst {dimension_numbers = #tpu.dot_dimension_numbers<[1], [0], [0], [1], [0, 0, 1, 1], [], []>} : vector<8x32xf32>, vector<32x128xf32>, vector<8x128xf32> -> vector<8x128xf32>
    %c0_4 = arith.constant 0 : index
    %c0_5 = arith.constant 0 : index
    %6 = vector.load %arg5[%c0_4, %c0_5] : memref<1x128xf32, #tpu.memory_space<vmem>>, vector<1x128xf32>
    %7 = vector.broadcast %6 : vector<1x128xf32> to vector<8x128xf32>
    %8 = arith.addf %5, %7 : vector<8x128xf32>
    %c0_6 = arith.constant 0 : index
    %c0_7 = arith.constant 0 : index
    %9 = vector.load %arg6[%c0_6, %c0_7] : memref<8x128xf32, #tpu.memory_space<vmem>>, vector<8x128xf32>
    tpu.vector_store %arg6[%c0_6, %c0_7], %8 {strides = array<i32>} : memref<8x128xf32, #tpu.memory_space<vmem>>, vector<8x128xf32>,
    %c0_8 = arith.constant 0 : index
    %c0_9 = arith.constant 0 : index
    %10 = vector.load %arg4[%c0_8, %c0_9] : memref<128x128xf32, #tpu.memory_space<vmem>>, vector<128x128xf32>
    %c0_10 = arith.constant 0 : index
    %c0_11 = arith.constant 0 : index
    %11 = vector.load %arg7[%c0_10, %c0_11] : memref<8x128xf32, #tpu.memory_space<vmem>>, vector<8x128xf32>
    %c0_12 = arith.constant 0 : index
    %c0_13 = arith.constant 0 : index
    %12 = vector.load %arg6[%c0_12, %c0_13] : memref<8x128xf32, #tpu.memory_space<vmem>>, vector<8x128xf32>
    %cst_14 = arith.constant dense<0.000000e+00> : vector<8x128xf32>
    %13 = tpu.matmul %11, %10, %cst_14 {dimension_numbers = #tpu.dot_dimension_numbers<[1], [0], [0], [1], [0, 0, 1, 1], [], []>} : vector<8x128xf32>, vector<128x128xf32>, vector<8x128xf32> -> vector<8x128xf32>
    %14 = arith.addf %12, %13 : vector<8x128xf32>
    %cst_15 = arith.constant 0.000000e+00 : f32
    %15 = vector.broadcast %cst_15 : f32 to vector<8x128xf32>
    %16 = arith.maximumf %14, %15 : vector<8x128xf32>
    %c0_16 = arith.constant 0 : index
    %c0_17 = arith.constant 0 : index
    %17 = vector.load %arg6[%c0_16, %c0_17] : memref<8x128xf32, #tpu.memory_space<vmem>>, vector<8x128xf32>
    tpu.vector_store %arg6[%c0_16, %c0_17], %16 {strides = array<i32>} : memref<8x128xf32, #tpu.memory_space<vmem>>, vector<8x128xf32>,
    %c0_18 = arith.constant 0 : index
    %c0_19 = arith.constant 0 : index
    %18 = vector.load %arg7[%c0_18, %c0_19] : memref<8x128xf32, #tpu.memory_space<vmem>>, vector<8x128xf32>
    tpu.vector_store %arg7[%c0_18, %c0_19], %16 {strides = array<i32>} : memref<8x128xf32, #tpu.memory_space<vmem>>, vector<8x128xf32>,
    return
  }
  func.func @transform_0(%arg0: i32) -> (i32, i32) {
    %c0_i32 = arith.constant 0 : i32
    %c0_i32_0 = arith.constant 0 : i32
    return %arg0, %c0_i32 : i32, i32
  }
  func.func @transform_1(%arg0: i32) -> (i32, i32) {
    %c0_i32 = arith.constant 0 : i32
    %c0_i32_0 = arith.constant 0 : i32
    %c0_i32_1 = arith.constant 0 : i32
    return %c0_i32, %c0_i32_0 : i32, i32
  }
  func.func @transform_2(%arg0: i32) -> (i32, i32) {
    %c0_i32 = arith.constant 0 : i32
    %c0_i32_0 = arith.constant 0 : i32
    %c0_i32_1 = arith.constant 0 : i32
    return %c0_i32, %c0_i32_0 : i32, i32
  }
  func.func @transform_3(%arg0: i32) -> (i32, i32) {
    %c0_i32 = arith.constant 0 : i32
    %c0_i32_0 = arith.constant 0 : i32
    %c0_i32_1 = arith.constant 0 : i32
    return %c0_i32, %c0_i32_0 : i32, i32
  }
  func.func @transform_4(%arg0: i32) -> (i32, i32) {
    %c0_i32 = arith.constant 0 : i32
    %c0_i32_0 = arith.constant 0 : i32
    %c0_i32_1 = arith.constant 0 : i32
    return %c0_i32, %c0_i32_0 : i32, i32
  }
  func.func @transform_5(%arg0: i32) -> (i32, i32) {
    %c0_i32 = arith.constant 0 : i32
    %c0_i32_0 = arith.constant 0 : i32
    return %arg0, %c0_i32 : i32, i32
  }
}

</mosaic_0001>

<bundles_post_ra>
// kernel: tpu_custom_call.1
= control target key start
LH: loop header
LB: loop body
LE: loop exit
PB: predicated region body
PF: predicated region fallthrough
CT: control target
= control target key end

     0   :  { %10 = vsyncpa [#allocation4], 0  ;;  %s373_s0 = inlined_call_operand.hbm [shape: f32[8,32], index: 0, kind: input, shape index: {}]   ;;  %s374_s1 = inlined_call_operand.hbm [shape: f32[8,128], index: 1, kind: input, shape index: {}]   ;;  %s375_s2 = inlined_call_operand.hbm [shape: f32[32,128], index: 2, kind: input, shape index: {}]   ;;  %s376_s3 = inlined_call_operand.hbm [shape: f32[128,128], index: 3, kind: input, shape index: {}]   ;;  %s377_s4 = inlined_call_operand.vmem [shape: f32[1,128], index: 4, kind: input, shape index: {}]   ;;  %s378_s5 = inlined_call_operand.hbm [shape: f32[8,128], index: 5, kind: output, shape index: {}]  }
   0x1   :  { %11 = vsyncpa [#allocation7], 0 }
   0x2   :  { %12 = vsyncpa [#allocation10], 0  ;;  %s30_s20 = sshll.u32 %s374_s1, 4  ;;  %s31_s20 = int_to_ptr.hbm [resolvable:$true] %s30_s20 }
   0x3   :  { %13 = vsyncpa [#allocation5], 0  ;;  %s318_s21 = smov [#allocation6]   ;;  %s19_s25 = sshll.u32 %s373_s0, 4  ;;  %s20_s25 = int_to_ptr.hbm [resolvable:$true] %s19_s25 }
   0x4   :  { %s32_s22 = sshll.u32 %s318_s21, 4  ;;  %s319_s26 = smov [#allocation3]   ;;  %s33_s22 = int_to_ptr.vmem [resolvable:$true] %s32_s22 }
   0x5   :  { %35 = dma.hbm_to_vmem [thread:$0]  %s31_s20, 128, %s33_s22, [#allocation7]  }
   0x6   :  { %s21_s27 = sshll.u32 %s319_s26, 4  ;;  %s40_s30 = sshll.u32 %s375_s2, 4  ;;  %s22_s27 = int_to_ptr.vmem [resolvable:$true] %s21_s27  ;;  %s41_s30 = int_to_ptr.hbm [resolvable:$true] %s40_s30 }
   0x7   :  { %24 = dma.hbm_to_vmem [thread:$0]  %s20_s25, 128, %s22_s27, [#allocation4]  }
   0x8   :  { %s320_s1 = smov [#allocation8]   ;;  %s53_s9 = sshll.u32 %s376_s3, 4  ;;  %s54_s9 = int_to_ptr.hbm [resolvable:$true] %s53_s9 }
   0x9   :  { %s42_s6 = sshll.u32 %s320_s1, 4  ;;  %s321_s10 = smov 128   ;;  %s43_s6 = int_to_ptr.vmem [resolvable:$true] %s42_s6 }
   0xa   :  { %s322_s0 = smov 8   ;;  %s323_s11 = smov [#allocation9]  }
   0xb   :  { %48 = dma.hbm_to_vmem [thread:$0]  %s41_s30, 512, %s43_s6, [#allocation7], %s321_s10, %s321_s10, %s322_s0  }
   0xc   :  { %s55_s12 = sshll.u32 %s323_s11, 4  ;;  %s56_s12 = int_to_ptr.vmem [resolvable:$true] %s55_s12 }
   0xd   :  { %61 = dma.hbm_to_vmem [thread:$0]  %s54_s9, 2048, %s56_s12, [#allocation10], %s321_s10, %s321_s10, %s322_s0  }
   0xe   :  { %310 = dma.done.wait [#allocation4], 128  }
   0xf   :  { %311 = vsyncadd [#allocation4], 4294967168 }
  0x10   :  { %312 = dma.done.wait [#allocation7], 640  }
  0x11   :  { %313 = vsyncadd [#allocation7], 4294966656 }
  0x12   :  { %314 = dma.done.wait [#allocation10], 2048  }
  0x13   :  { %315 = vsyncadd [#allocation10], 4294965248  ;;  %v135_v0 = vld [vmem:[#allocation9 + $0x78] sm:$0xff]  ;;  %v134_v1 = vld [vmem:[#allocation9 + $0x70] sm:$0xff]  ;;  %vm95_vm0 = vcmask 261120   ;;  %s324_s13 = smov [#allocation11]  }
  0x14   :  { %138 = vmatpush.msra.mxu1 %v135_v0  ;;  %v133_v2 = vld [vmem:[#allocation9 + $0x68] sm:$0xff]  ;;  %v90_v3 = vld [vmem:[#allocation8 + $0x18] sm:$0xff]  ;;  %v89_v4 = vld [vmem:[#allocation8 + $0x10] sm:$0xff]  ;;  %s167_s14 = sshll.u32 %s324_s13, 4  ;;  %s169_s17 = sshll.u32 %s378_s5, 4  ;;  %s168_s14 = int_to_ptr.vmem [resolvable:$true] %s167_s14  ;;  %s170_s17 = int_to_ptr.hbm [resolvable:$true] %s169_s17 }
  0x15   :  { %111 = vmatpush.msra.mxu0 %v90_v3  ;;  %v132_v5 = vld [vmem:[#allocation9 + $0x60] sm:$0xff]  ;;  %v88_v6 = vld [vmem:[#allocation8 + $0x8] sm:$0xff]  ;;  %v131_v7 = vld [vmem:[#allocation9 + $0x58] sm:$0xff] }
  0x16   :  { %139 = vmatpush.msra.mxu1 %v134_v1  ;;  %v87_v8 = vld [vmem:[#allocation8] sm:$0xff]  ;;  %v86_v9 = vld [vmem:[#allocation3] sm:$0xff]  ;;  %v129_v11 = vld [vmem:[#allocation9 + $0x48] sm:$0xff] }
  0x17   :  { %112 = vmatpush.msra.mxu0 %v89_v4  ;;  %v130_v10 = vld [vmem:[#allocation9 + $0x50] sm:$0xff]  ;;  %v128_v12 = vld [vmem:[#allocation9 + $0x40] sm:$0xff]  ;;  %v127_v13 = vld [vmem:[#allocation9 + $0x38] sm:$0xff] }
  0x18   :  { %140 = vmatpush.msra.mxu1 %v133_v2  ;;  %v126_v14 = vld [vmem:[#allocation9 + $0x30] sm:$0xff]  ;;  %v125_v15 = vld [vmem:[#allocation9 + $0x28] sm:$0xff]  ;;  %v124_v16 = vld [vmem:[#allocation9 + $0x20] sm:$0xff] }
  0x19   :  { %113 = vmatpush.msra.mxu0 %v88_v6  ;;  %v123_v17 = vld [vmem:[#allocation9 + $0x18] sm:$0xff]  ;;  %v122_v18 = vld [vmem:[#allocation9 + $0x10] sm:$0xff]  ;;  %v121_v19 = vld [vmem:[#allocation9 + $0x8] sm:$0xff] }
  0x1a   :  { %141 = vmatpush.msra.mxu1 %v132_v5  ;;  %v120_v20 = vld [vmem:[#allocation9] sm:$0xff]  ;;  %v84_v21 = vld [vmem:[#allocation6] sm:$0xff]  ;;  %v189_v22 = vld [vmem:[%s377_s4] ss:$0 sm:$0xff] }
  0x1b   :  { %114 = vmatpush.msra.mxu0 %v87_v8 }
  0x1c   :  { %142 = vmatpush.msra.mxu1 %v131_v7  ;;  %181 = vmatmul.msk.f32.vlgmr.msra.gmra.mxu0 %vm95_vm0, %v86_v9 }
  0x1e   :  { %143 = vmatpush.msra.mxu1 %v130_v10 }
  0x20   :  { %144 = vmatpush.msra.mxu1 %v129_v11 }
  0x22   :  { %145 = vmatpush.msra.mxu1 %v128_v12 }
  0x24   :  { %146 = vmatpush.msra.mxu1 %v127_v13 }
  0x26   :  { %147 = vmatpush.msra.mxu1 %v126_v14 }
  0x28   :  { %148 = vmatpush.msra.mxu1 %v125_v15 }
  0x2a   :  { %149 = vmatpush.msra.mxu1 %v124_v16 }
  0x2c   :  { %150 = vmatpush.msra.mxu1 %v123_v17 }
  0x2e   :  { %151 = vmatpush.msra.mxu1 %v122_v18 }
  0x30   :  { %152 = vmatpush.msra.mxu1 %v121_v19 }
  0x32   :  { %153 = vmatpush.msra.mxu1 %v120_v20 }
  0x33   :  { %154 = vmatmul.f32.vlgmr.msra.gmra.mxu1 %v84_v21 }
  0x99   :  { %v116_v23 = vpop.f32.mrf.mxu0 }
  0x9a   :  { %v117_v24 = vadd.f32 %v189_v22, %v116_v23 }
  0xb0   :  { %v155_v25 = vpop.f32.mrf.mxu1 }
  0xb1   :  { %v158_v26 = vadd.f32 %v155_v25, %v117_v24 }
  0xb3   :  { %v159_v27 = vmax.f32 %v158_v26, 0.0 }
  0xb5   :  { %160 = vst [vmem:[#allocation11] sm:$0xff] %v159_v27 }
  0xb6   :  { %172 = dma.vmem_to_hbm [thread:$0]  %s168_s14, 128, %s170_s17, [#allocation5]  }
  0xb7   :  { %316 = dma.done.wait [#allocation5], 128  }
  0xb8   :  { %317 = vsyncadd [#allocation5], 4294967168 }
  0xb9   :  { %177 = vsyncpa [#allocation4], 1 }
  0xba   :  { %178 = vsyncpa [#allocation7], 1 }
  0xbb   :  { %179 = vsyncpa [#allocation10], 1 }
  0xbc   :  { %180 = vsyncpa [#allocation5], 1 }

</bundles_post_ra>
